<compile_context>
chip_gen: v5e
topology: v5e:2x2
jax: 0.10.0
libtpu: 0.0.40
codegen_flags: <defaults>
</compile_context>

<pallas_src>
import math

import jax
import jax.numpy as jnp
from jax.experimental import pallas as pl
from jax.experimental.pallas import tpu as pltpu


def _elementwise_kernel(vec_ref, x_ref, o_ref):
    # vec_ref: (1, lane_tile) broadcasts over the (tile_rows, lane_tile) x tile.
    o_ref[...] = (x_ref[...] * vec_ref[...]).astype(o_ref.dtype)


def _hw_defaults():
    """Returns (pipeline-buffer VMEM budget in bytes, min row-grid blocks)."""
    kind = ""
    try:
        kind = jax.devices()[0].device_kind.lower()
    except Exception:
        pass
    if "v5 lite" in kind or "v5e" in kind or "v5litepod" in kind:
        return 8 << 20, 1     # 16 MiB scoped default; 1 TC; ~2 MiB blocks
    if "v7" in kind:
        return 24 << 20, 2    # ~6 MiB blocks; under 32 MiB scoped / 64 MiB phys; 2 TCs
    if "v6" in kind:
        return 20 << 20, 1    # ~5 MiB blocks; under 32 MiB scoped default
    if "v4" in kind or "v5p" in kind or "v5 p" in kind:
        return 8 << 20, 2     # megacore chips, conservative VMEM budget
    return 8 << 20, 1         # unknown: conservative


def _sublane_align(*dtypes):
    """Row alignment = sublane packing of the narrowest dtype (8/16/32 rows)."""
    align = 8
    for dt in dtypes:
        item = jnp.dtype(dt).itemsize
        if 0 < item < 4:
            align = max(align, 8 * (4 // item))
    return align


def elementwise_layer(vec, x):
    """out = vec * x with vec (dim,) broadcast over the last axis of x."""
    dim = vec.shape[-1]
    assert x.shape[-1] == dim, "last dim of input must equal `dim`"

    out_dtype = jnp.result_type(vec.dtype, x.dtype)
    orig_shape = x.shape

    # Empty input: nothing to launch (grid=(0,) would fail validation).
    if x.size == 0:
        return jnp.zeros(orig_shape, out_dtype)

    vmem_budget, min_row_blocks = _hw_defaults()

    # Flatten leading dims to rows; matches torch's broadcast of (dim,).
    x2d = x.reshape(-1, dim)
    m = x2d.shape[0]
    vec_row = vec.reshape(1, dim)

    # Lane-density: fold rows into the lane axis so the block's lane width is
    # a multiple of 128 (unmasked stores, full lane utilization). Minimal fold
    # via lcm: fold = 128 // gcd(dim, 128) covers non-power-of-two dims too.
    lane_dim = dim
    if dim % 128 != 0:
        f = 128 // math.gcd(dim, 128)
        if f > 1 and m % f == 0 and dim * f <= 16384:
            lane_dim = dim * f                        # multiple of 128
            x2d = x2d.reshape(m // f, lane_dim)       # contiguous reshape, no copy
            vec_row = jnp.tile(vec_row, (1, f))       # (1, lane_dim)
            m = m // f
        # TODO(synk): when m % f != 0, fold the divisible bulk and run the
        # < f leftover rows through a second tiny call instead of giving up
        # lane-dense stores on the whole array.

    x_item = jnp.dtype(x2d.dtype).itemsize
    out_item = jnp.dtype(out_dtype).itemsize
    row_align = _sublane_align(x2d.dtype, out_dtype)

    # Double-buffered pipeline bytes per block element (x in + out).
    bytes_per_elem = 2 * (x_item + out_item)

    # Lane-axis tiling (2D grid) only matters when a minimal-row block would
    # exceed the VMEM budget; it requires lane_dim % 128 == 0 (otherwise the
    # only legal lane block is the full lane_dim).
    if lane_dim % 128 == 0:
        max_lanes = (vmem_budget // (row_align * bytes_per_elem)) // 128 * 128
        lane_tile = int(min(lane_dim, max(128, max_lanes)))
    else:
        lane_tile = lane_dim
    num_lane_blocks = int(pl.cdiv(lane_dim, lane_tile))

    # Row tile: largest multiple of the sublane alignment that keeps the
    # double-buffered x+out blocks within the per-generation VMEM budget.
    rows_fit = (vmem_budget // (lane_tile * bytes_per_elem)) // row_align * row_align
    rows_fit = max(row_align, rows_fit)
    rows_needed = int(pl.cdiv(m, row_align)) * row_align
    tile_rows = int(min(rows_fit, rows_needed))

    # On 2-TensorCore chips, guarantee >= 2 grid steps when the array is
    # bigger than one aligned row group, so megacore has work to split.
    if (min_row_blocks > 1 and num_lane_blocks == 1
            and rows_needed > row_align and tile_rows >= rows_needed):
        tile_rows = int(max(row_align,
                            pl.cdiv(pl.cdiv(m, 2), row_align) * row_align))

    grid = (int(pl.cdiv(m, tile_rows)), num_lane_blocks)

    out = pl.pallas_call(
        _elementwise_kernel,
        out_shape=jax.ShapeDtypeStruct((m, lane_dim), out_dtype),
        grid_spec=pl.GridSpec(
            grid=grid,
            in_specs=[
                # vec: constant row-block index -> stays resident in VMEM
                # across the row axis; re-fetched only per lane block.
                pl.BlockSpec((1, lane_tile), lambda i, j: (0, j)),
                # x: one lane-dense tile per grid step; ragged last blocks are
                # read-padded / write-masked by Pallas (no jnp.pad round trip).
                pl.BlockSpec((tile_rows, lane_tile), lambda i, j: (i, j)),
            ],
            out_specs=pl.BlockSpec((tile_rows, lane_tile), lambda i, j: (i, j)),
        ),
        compiler_params=pltpu.CompilerParams(
            dimension_semantics=("parallel", "parallel"),
        ),
    )(vec_row, x2d)

    # TODO(synk): if out_dtype == x.dtype and the caller can donate x, pass
    # input_output_aliases={1: 0} to drop the second full-size HBM allocation.
    return out.reshape(orig_shape)


if __name__ == "__main__":
    # Module: ElementWiseLayer(dim) -> self.vec = torch.randn(dim)
    dim = 32       # hidden size
    batch = 2
    seq = 8

    key = jax.random.PRNGKey(0)
    k_vec, k_x = jax.random.split(key)

    vec = jax.random.normal(k_vec, (dim,), dtype=jnp.float32)   # self.vec
    x = jax.random.normal(k_x, (batch, seq, dim), dtype=jnp.float32)

    out = jax.block_until_ready(elementwise_layer(vec, x))
    ref = vec * x
    assert out.shape == x.shape and out.dtype == ref.dtype
    assert jnp.allclose(out, ref, atol=1e-6, rtol=1e-6), "mismatch vs reference"

    # Ragged row count w.r.t. the tile / fold (masked-tail + no-fold path).
    x_big = jax.random.normal(jax.random.PRNGKey(1), (3, 7, dim), jnp.float32)
    out_big = jax.block_until_ready(elementwise_layer(vec, x_big))
    assert jnp.allclose(out_big, vec * x_big, atol=1e-6, rtol=1e-6)

    # Non-power-of-two dim exercising the lcm-based lane fold (dim=96 -> fold 4).
    dim2 = 96
    vec2 = jax.random.normal(jax.random.PRNGKey(2), (dim2,), jnp.float32)
    x2 = jax.random.normal(jax.random.PRNGKey(3), (2, 4, dim2), jnp.float32)
    out2 = jax.block_until_ready(elementwise_layer(vec2, x2))
    assert jnp.allclose(out2, vec2 * x2, atol=1e-6, rtol=1e-6)

    # Mixed dtypes (bf16 activations, f32 vec) exercising sublane-packing
    # alignment and in-kernel promotion.
    x_bf16 = x.astype(jnp.bfloat16)
    out_mixed = jax.block_until_ready(elementwise_layer(vec, x_bf16))
    assert out_mixed.dtype == jnp.result_type(vec.dtype, x_bf16.dtype)
    assert jnp.allclose(out_mixed, vec * x_bf16, atol=1e-6, rtol=1e-6)

    # Empty input early-return path.
    out_empty = jax.block_until_ready(
        elementwise_layer(vec, jnp.zeros((0, seq, dim), jnp.float32)))
    assert out_empty.shape == (0, seq, dim)

    print("KERNEL_OK")
</pallas_src>

<mosaic_0001>
module attributes {stable_mosaic.version = 11 : i64} {
  func.func @_elementwise_kernel(%arg0: i32, %arg1: i32, %arg2: memref<1x128xf32, #tpu.memory_space<vmem>>, %arg3: memref<8x128xf32, #tpu.memory_space<vmem>>, %arg4: memref<8x128xf32, #tpu.memory_space<vmem>>) attributes {dimension_semantics = [#tpu.dimension_semantics<parallel>, #tpu.dimension_semantics<parallel>], iteration_bounds = array<i64: 1, 1>, scalar_prefetch = 0 : i64, scratch_operands = 0 : i64, tpu.core_type = #tpu.core_type<tc>, window_params = [{transform_indices = @transform_0, window_bounds = array<i64: 1, 128>}, {transform_indices = @transform_1, window_bounds = array<i64: 8, 128>}, {transform_indices = @transform_2, window_bounds = array<i64: 8, 128>}]} {
    %c0 = arith.constant 0 : index
    %c0_0 = arith.constant 0 : index
    %0 = vector.load %arg3[%c0, %c0_0] : memref<8x128xf32, #tpu.memory_space<vmem>>, vector<8x128xf32>
    %c0_1 = arith.constant 0 : index
    %c0_2 = arith.constant 0 : index
    %1 = vector.load %arg2[%c0_1, %c0_2] : memref<1x128xf32, #tpu.memory_space<vmem>>, vector<1x128xf32>
    %2 = vector.broadcast %1 : vector<1x128xf32> to vector<8x128xf32>
    %3 = arith.mulf %0, %2 : vector<8x128xf32>
    %c0_3 = arith.constant 0 : index
    %c0_4 = arith.constant 0 : index
    %4 = vector.load %arg4[%c0_3, %c0_4] : memref<8x128xf32, #tpu.memory_space<vmem>>, vector<8x128xf32>
    tpu.vector_store %arg4[%c0_3, %c0_4], %3 {strides = array<i32>} : memref<8x128xf32, #tpu.memory_space<vmem>>, vector<8x128xf32>,
    return
  }
  func.func @transform_0(%arg0: i32, %arg1: i32) -> (i32, i32) {
    %c0_i32 = arith.constant 0 : i32
    %c0_i32_0 = arith.constant 0 : i32
    return %c0_i32, %arg1 : i32, i32
  }
  func.func @transform_1(%arg0: i32, %arg1: i32) -> (i32, i32) {
    %c0_i32 = arith.constant 0 : i32
    return %arg0, %arg1 : i32, i32
  }
  func.func @transform_2(%arg0: i32, %arg1: i32) -> (i32, i32) {
    %c0_i32 = arith.constant 0 : i32
    return %arg0, %arg1 : i32, i32
  }
}

</mosaic_0001>

<bundles_post_ra>
// kernel: tpu_custom_call.1
= control target key start
LH: loop header
LB: loop body
LE: loop exit
PB: predicated region body
PF: predicated region fallthrough
CT: control target
= control target key end

     0   :  { %7 = vsyncpa [#allocation3], 0  ;;  %s182_s0 = inlined_call_operand.hbm [shape: f32[1,128], index: 0, kind: input, shape index: {}]   ;;  %s183_s1 = inlined_call_operand.hbm [shape: f32[4,128], index: 1, kind: input, shape index: {}]   ;;  %s184_s2 = inlined_call_operand.hbm [shape: f32[4,128], index: 2, kind: output, shape index: {}]  }
   0x1   :  { %8 = vsyncpa [#allocation6], 0 }
   0x2   :  { %9 = vsyncpa [#allocation4], 0  ;;  %s15_s11 = sshll.u32 %s182_s0, 4  ;;  %s153_s12 = smov [#allocation2]   ;;  %s16_s11 = int_to_ptr.hbm [resolvable:$true] %s15_s11 }
   0x3   :  { %s17_s13 = sshll.u32 %s153_s12, 4  ;;  %s18_s13 = int_to_ptr.vmem [resolvable:$true] %s17_s13 }
   0x4   :  { %20 = dma.hbm_to_vmem [thread:$0]  %s16_s11, 16, %s18_s13, [#allocation3]  }
   0x5   :  { %24 = vsyncadd [#allocation6], 64  ;;  %s25_s16 = sshll.u32 %s183_s1, 4  ;;  %s154_s17 = smov [#allocation5]   ;;  %s26_s16 = int_to_ptr.hbm [resolvable:$true] %s25_s16 }
   0x6   :  { %s27_s18 = sshll.u32 %s154_s17, 4  ;;  %s155_s19 = smov 64   ;;  %s28_s18 = int_to_ptr.vmem [resolvable:$true] %s27_s18 }
   0x7   :  { %s156_s20 = smov 4  }
   0x8   :  { %33 = dma.hbm_to_vmem [thread:$0]  %s26_s16, 64, %s28_s18, [#allocation6], %s155_s19, %s155_s19, %s156_s20  }
   0x9   :  { %147 = dma.done.wait [#allocation3], 16  }
   0xa   :  { %148 = vsyncadd [#allocation3], 4294967280 }
   0xb   :  { %149 = dma.done.wait [#allocation6], 128  }
   0xc   :  { %150 = vsyncadd [#allocation6], 4294967168  ;;  %v42_v0 = vld [vmem:[#allocation5] sm:$0xff]  ;;  %v74_v1 = vld [vmem:[#allocation2] ss:$0 sm:$0xff] }
   0xd   :  { %v47_v2 = vmul.f32 %v74_v1, %v42_v0 }
   0xf   :  { %48 = vst [vmem:[#allocation7] sm:$0xff] %v47_v2 }
  0x10   :  { %52 = vsyncadd [#allocation4], 64  ;;  %s55_s1 = sshll.u32 %s184_s2, 4  ;;  %s157_s22 = smov [#allocation7]   ;;  %s56_s1 = int_to_ptr.hbm [resolvable:$true] %s55_s1 }
  0x11   :  { %s53_s23 = sshll.u32 %s157_s22, 4  ;;  %s54_s23 = int_to_ptr.vmem [resolvable:$true] %s53_s23 }
  0x12   :  { %61 = dma.vmem_to_hbm [thread:$0]  %s54_s23, 64, %s56_s1, [#allocation4], %s155_s19, %s155_s19, %s156_s20  }
  0x13   :  { %151 = dma.done.wait [#allocation4], 128  }
  0x14   :  { %152 = vsyncadd [#allocation4], 4294967168 }
  0x15   :  { %66 = vsyncpa [#allocation3], 1 }
  0x16   :  { %67 = vsyncpa [#allocation6], 1 }
  0x17   :  { %68 = vsyncpa [#allocation4], 1 }

</bundles_post_ra>
